<compile_context>
chip_gen: v7x
topology: tpu7x:2x2x1
jax: 0.10.0
libtpu: 0.0.40
codegen_flags: <defaults>
</compile_context>

<pallas_src>
import functools

import jax
import jax.numpy as jnp
from jax.experimental import pallas as pl
from jax.experimental.pallas import tpu as pltpu

N_ACTIONS = 4
N_INPUTS = 33
H1 = 128
H2 = 64

OUT_PAD = 128                 # lane-dense output width (no masked vst.msk stores)
MU_OFF = H2                   # actor mu lives in lanes [64, 68)
VAL_OFF = H2 + N_ACTIONS      # critic value lives in lane 68

FLOPS_PER_ROW = 2 * (N_INPUTS * H1 + H1 * OUT_PAD + OUT_PAD * OUT_PAD)  # ~74 KFLOP


def _a2c_fused_kernel(s_ref, w1_ref, b1_ref, w2_ref, b2_ref, wh_ref, bh_ref, out_ref):
    x = s_ref[...]
    # fc1 + ReLU : (tb, 33) @ (33, 128) + (1, 128).  Weights may be bf16 (MXU
    # native on all generations); accumulate f32, bias/ReLU in f32 (v5e VPU).
    h1 = jnp.dot(x.astype(w1_ref.dtype), w1_ref[...],
                 preferred_element_type=jnp.float32)
    h1 = jnp.maximum(h1 + b1_ref[...], 0.0)
    # fc2 (zero-padded to 128 lanes) + ReLU : (tb, 128) @ (128, 128) + (1, 128)
    h2 = jnp.dot(h1.astype(w2_ref.dtype), w2_ref[...],
                 preferred_element_type=jnp.float32)
    h2 = jnp.maximum(h2 + b2_ref[...], 0.0)
    # Fused head epilogue, kept f32 so the identity passthrough of `hidden` is
    # not bf16-rounded: [identity passthrough | actor W | critic W | 0].
    out = jnp.dot(h2, wh_ref[...], preferred_element_type=jnp.float32)
    out_ref[...] = (out + bh_ref[...]).astype(out_ref.dtype)


def init_params(key):
    """nn.Linear default init (uniform +-1/sqrt(fan_in)) for fc1, fc2, actor, critic.

    Weights are stored (in_features, out_features), i.e. transposed vs nn.Linear.
    """
    ks = jax.random.split(key, 8)

    def linear(kw, kb, fan_in, fan_out):
        lim = 1.0 / jnp.sqrt(jnp.float32(fan_in))
        w = jax.random.uniform(kw, (fan_in, fan_out), jnp.float32, -lim, lim)
        b = jax.random.uniform(kb, (fan_out,), jnp.float32, -lim, lim)
        return w, b

    w1, b1 = linear(ks[0], ks[1], N_INPUTS, H1)
    w2, b2 = linear(ks[2], ks[3], H1, H2)
    wa, ba = linear(ks[4], ks[5], H2, N_ACTIONS)
    wc, bc = linear(ks[6], ks[7], H2, 1)
    return w1, b1, w2, b2, wa, ba, wc, bc


def pack_params(w1, b1, w2, b2, wa, ba, wc, bc, *, weights_dtype=jnp.bfloat16):
    """One-time packing of raw params into lane-dense kernel operands.

    fc1/fc2 weights are stored in `weights_dtype` (bf16 by default -- MXU native).
    The combined head matrix / bias stay f32 so the hidden passthrough is exact.
    """
    w1p = w1.astype(weights_dtype)                                       # (33, 128)
    b1p = b1.reshape(1, H1).astype(jnp.float32)                          # (1, 128)

    w2p = jnp.zeros((H1, OUT_PAD), jnp.float32).at[:, :H2].set(w2)       # (128, 128)
    w2p = w2p.astype(weights_dtype)
    b2p = jnp.zeros((1, OUT_PAD), jnp.float32).at[0, :H2].set(b2)        # (1, 128)

    # Combined head matrix: hidden passthrough (identity) + actor + critic.  f32.
    wh = jnp.zeros((OUT_PAD, OUT_PAD), jnp.float32)
    wh = wh.at[:H2, :H2].set(jnp.eye(H2, dtype=jnp.float32))
    wh = wh.at[:H2, MU_OFF:MU_OFF + N_ACTIONS].set(wa)
    wh = wh.at[:H2, VAL_OFF:VAL_OFF + 1].set(wc)
    bh = jnp.zeros((1, OUT_PAD), jnp.float32)
    bh = bh.at[0, MU_OFF:MU_OFF + N_ACTIONS].set(ba)
    bh = bh.at[0, VAL_OFF].set(bc[0])
    return w1p, b1p, w2p, b2p, wh, bh


def _round_up(x, m):
    return (x + m - 1) // m * m


def _choose_tile(b_padded, tile_b):
    """Batch tile: big enough to amortize per-step overhead, but keep >=2 grid
    steps whenever the batch allows it so v7x's two TensorCores both get work."""
    if b_padded <= 2 * tile_b:
        return min(b_padded, _round_up(pl.cdiv(b_padded, 2), 8))
    return tile_b


@functools.partial(jax.jit, static_argnames=("tile_b", "out_dtype"))
def a2c_forward_slab(s, packed, *, tile_b=1024, out_dtype=jnp.float32):
    """Fused A2C forward.  Returns a lane-dense (B, 128) slab:
       lanes [0,64)   : hidden = relu(fc2(relu(fc1(s))))   (PyTorch forward())
       lanes [64,68)  : mu     = actor(hidden)
       lane  68       : value  = critic(hidden)
       lanes [69,128) : zero padding
    Consume the slab in place downstream when possible (avoids re-slicing HBM
    traffic); use unpack_slab() otherwise.
    """
    w1p, b1p, w2p, b2p, wh, bh = packed
    B = s.shape[0]
    Bp = _round_up(max(B, 8), 8)
    if Bp != B:                       # ragged / tiny batch: pad to sublane multiple
        s = jnp.pad(s, ((0, Bp - B), (0, 0)))

    tb = _choose_tile(Bp, tile_b)
    grid = (pl.cdiv(Bp, tb),)
    const = lambda i: (0, 0)          # weights/biases: same block every step (VMEM-resident)

    weight_bytes = sum(int(a.size) * jnp.dtype(a.dtype).itemsize
                       for a in (w1p, b1p, w2p, b2p, wh, bh))
    out_bytes = Bp * OUT_PAD * jnp.dtype(out_dtype).itemsize
    cost = pl.CostEstimate(
        flops=Bp * FLOPS_PER_ROW,
        transcendentals=0,
        bytes_accessed=Bp * N_INPUTS * 4 + out_bytes + weight_bytes,
    )

    slab = pl.pallas_call(
        _a2c_fused_kernel,
        out_shape=jax.ShapeDtypeStruct((Bp, OUT_PAD), out_dtype),
        grid=grid,
        in_specs=[
            # Batch-tiled activations.  If a bundle dump shows exposed DMA waits
            # at large tb, add pipeline_mode=pl.Buffered(3) here and on out_specs.
            pl.BlockSpec((tb, N_INPUTS), lambda i: (i, 0)),
            pl.BlockSpec((N_INPUTS, H1), const),
            pl.BlockSpec((1, H1), const),
            pl.BlockSpec((H1, OUT_PAD), const),
            pl.BlockSpec((1, OUT_PAD), const),
            pl.BlockSpec((OUT_PAD, OUT_PAD), const),
            pl.BlockSpec((1, OUT_PAD), const),
        ],
        out_specs=pl.BlockSpec((tb, OUT_PAD), lambda i: (i, 0)),
        compiler_params=pltpu.CompilerParams(
            dimension_semantics=("parallel",)),   # batch tiles shard across TCs on v7x
        cost_estimate=cost,
    )(s, w1p, b1p, w2p, b2p, wh, bh)

    if Bp != B:
        slab = slab[:B]
    return slab


def unpack_slab(slab):
    """Slice the packed slab into (hidden, mu, value).  Prefer consuming the slab
    directly in fused downstream code; this helper is for API parity/tests."""
    hidden = slab[:, :H2]
    mu = slab[:, MU_OFF:MU_OFF + N_ACTIONS]
    value = slab[:, VAL_OFF]
    return hidden, mu, value


def a2c_forward_fused(s, packed, **kwargs):
    """Convenience wrapper returning (hidden, mu, value) like the PyTorch heads."""
    return unpack_slab(a2c_forward_slab(s, packed, **kwargs))


if __name__ == "__main__":
    key = jax.random.PRNGKey(0)
    k_params, k_s, k_s2, k_s3 = jax.random.split(key, 4)
    raw = init_params(k_params)
    w1, b1, w2, b2, wa, ba, wc, bc = raw

    def ref_forward(s):
        h = jnp.maximum(jnp.maximum(s @ w1 + b1, 0.0) @ w2 + b2, 0.0)
        return h, h @ wa + ba, (h @ wc + bc)[:, 0]

    # (1) RL-rollout small batch (n_process = 8), f32 weights -> tight parity.
    packed_f32 = pack_params(*raw, weights_dtype=jnp.float32)
    B = 8
    s = jax.random.normal(k_s, (B, N_INPUTS), jnp.float32)
    hidden, mu, value = a2c_forward_fused(s, packed_f32)
    jax.block_until_ready(hidden)
    rh, rmu, rv = ref_forward(s)
    assert hidden.shape == (B, H2)
    assert mu.shape == (B, N_ACTIONS)
    assert value.shape == (B,)
    assert jnp.allclose(hidden, rh, atol=1e-4, rtol=1e-4)
    assert jnp.allclose(mu, rmu, atol=1e-4, rtol=1e-4)
    assert jnp.allclose(value, rv, atol=1e-4, rtol=1e-4)

    # (2) Ragged batch (B % 8 != 0) exercises the upstream pad path + a partial
    #     last block in a 2-step grid; still f32-tight.
    B3 = 37
    s3 = jax.random.normal(k_s3, (B3, N_INPUTS), jnp.float32)
    h3, mu3, v3 = a2c_forward_fused(s3, packed_f32)
    jax.block_until_ready(h3)
    rh3, rmu3, rv3 = ref_forward(s3)
    assert h3.shape == (B3, H2) and mu3.shape == (B3, N_ACTIONS) and v3.shape == (B3,)
    assert jnp.allclose(h3, rh3, atol=1e-4, rtol=1e-4)
    assert jnp.allclose(mu3, rmu3, atol=1e-4, rtol=1e-4)
    assert jnp.allclose(v3, rv3, atol=1e-4, rtol=1e-4)

    # (3) Training-size batch with the perf-default bf16 fc1/fc2 weights: the
    #     grid splits into >=2 batch tiles (both v7x TCs busy); parity is checked
    #     against the f32 reference with a bf16-appropriate tolerance.
    packed_bf16 = pack_params(*raw)            # weights_dtype=bf16 by default
    B2 = 512
    s2 = jax.random.normal(k_s2, (B2, N_INPUTS), jnp.float32)
    slab2 = a2c_forward_slab(s2, packed_bf16)  # consume slab in place downstream
    jax.block_until_ready(slab2)
    h2o, mu2, v2 = unpack_slab(slab2)
    rh2, rmu2, rv2 = ref_forward(s2)
    assert jnp.allclose(h2o, rh2, atol=5e-2, rtol=5e-2)
    assert jnp.allclose(mu2, rmu2, atol=5e-2, rtol=5e-2)
    assert jnp.allclose(v2, rv2, atol=5e-2, rtol=5e-2)

    print("KERNEL_OK")
</pallas_src>

<mosaic_0001>
module attributes {stable_mosaic.version = 11 : i64} {
  func.func @_a2c_fused_kernel(%arg0: i32, %arg1: memref<8x33xf32, #tpu.memory_space<vmem>>, %arg2: memref<33x128xf32, #tpu.memory_space<vmem>>, %arg3: memref<1x128xf32, #tpu.memory_space<vmem>>, %arg4: memref<128x128xf32, #tpu.memory_space<vmem>>, %arg5: memref<1x128xf32, #tpu.memory_space<vmem>>, %arg6: memref<128x128xf32, #tpu.memory_space<vmem>>, %arg7: memref<1x128xf32, #tpu.memory_space<vmem>>, %arg8: memref<8x128xf32, #tpu.memory_space<vmem>>) attributes {dimension_semantics = [#tpu.dimension_semantics<parallel>], iteration_bounds = array<i64: 1>, scalar_prefetch = 0 : i64, scratch_operands = 0 : i64, tpu.core_type = #tpu.core_type<tc>, window_params = [{transform_indices = @transform_0, window_bounds = array<i64: 8, 33>}, {pipeline_mode = #tpu.pipeline_mode<synchronous>, transform_indices = @transform_1, window_bounds = array<i64: 33, 128>}, {pipeline_mode = #tpu.pipeline_mode<synchronous>, transform_indices = @transform_2, window_bounds = array<i64: 1, 128>}, {pipeline_mode = #tpu.pipeline_mode<synchronous>, transform_indices = @transform_3, window_bounds = array<i64: 128, 128>}, {pipeline_mode = #tpu.pipeline_mode<synchronous>, transform_indices = @transform_4, window_bounds = array<i64: 1, 128>}, {pipeline_mode = #tpu.pipeline_mode<synchronous>, transform_indices = @transform_5, window_bounds = array<i64: 128, 128>}, {pipeline_mode = #tpu.pipeline_mode<synchronous>, transform_indices = @transform_6, window_bounds = array<i64: 1, 128>}, {transform_indices = @transform_7, window_bounds = array<i64: 8, 128>}]} {
    %c0 = arith.constant 0 : index
    %c0_0 = arith.constant 0 : index
    %0 = vector.load %arg1[%c0, %c0_0] : memref<8x33xf32, #tpu.memory_space<vmem>>, vector<8x33xf32>
    %c0_1 = arith.constant 0 : index
    %c0_2 = arith.constant 0 : index
    %1 = vector.load %arg2[%c0_1, %c0_2] : memref<33x128xf32, #tpu.memory_space<vmem>>, vector<33x128xf32>
    %cst = arith.constant dense<0.000000e+00> : vector<8x128xf32>
    %2 = tpu.matmul %0, %1, %cst {dimension_numbers = #tpu.dot_dimension_numbers<[1], [0], [0], [1], [0, 0, 1, 1], [], []>} : vector<8x33xf32>, vector<33x128xf32>, vector<8x128xf32> -> vector<8x128xf32>
    %c0_3 = arith.constant 0 : index
    %c0_4 = arith.constant 0 : index
    %3 = vector.load %arg3[%c0_3, %c0_4] : memref<1x128xf32, #tpu.memory_space<vmem>>, vector<1x128xf32>
    %4 = vector.broadcast %3 : vector<1x128xf32> to vector<8x128xf32>
    %5 = arith.addf %2, %4 : vector<8x128xf32>
    %cst_5 = arith.constant 0.000000e+00 : f32
    %6 = vector.broadcast %cst_5 : f32 to vector<8x128xf32>
    %7 = arith.maximumf %5, %6 : vector<8x128xf32>
    %c0_6 = arith.constant 0 : index
    %c0_7 = arith.constant 0 : index
    %8 = vector.load %arg4[%c0_6, %c0_7] : memref<128x128xf32, #tpu.memory_space<vmem>>, vector<128x128xf32>
    %cst_8 = arith.constant dense<0.000000e+00> : vector<8x128xf32>
    %9 = tpu.matmul %7, %8, %cst_8 {dimension_numbers = #tpu.dot_dimension_numbers<[1], [0], [0], [1], [0, 0, 1, 1], [], []>} : vector<8x128xf32>, vector<128x128xf32>, vector<8x128xf32> -> vector<8x128xf32>
    %c0_9 = arith.constant 0 : index
    %c0_10 = arith.constant 0 : index
    %10 = vector.load %arg5[%c0_9, %c0_10] : memref<1x128xf32, #tpu.memory_space<vmem>>, vector<1x128xf32>
    %11 = vector.broadcast %10 : vector<1x128xf32> to vector<8x128xf32>
    %12 = arith.addf %9, %11 : vector<8x128xf32>
    %cst_11 = arith.constant 0.000000e+00 : f32
    %13 = vector.broadcast %cst_11 : f32 to vector<8x128xf32>
    %14 = arith.maximumf %12, %13 : vector<8x128xf32>
    %c0_12 = arith.constant 0 : index
    %c0_13 = arith.constant 0 : index
    %15 = vector.load %arg6[%c0_12, %c0_13] : memref<128x128xf32, #tpu.memory_space<vmem>>, vector<128x128xf32>
    %cst_14 = arith.constant dense<0.000000e+00> : vector<8x128xf32>
    %16 = tpu.matmul %14, %15, %cst_14 {dimension_numbers = #tpu.dot_dimension_numbers<[1], [0], [0], [1], [0, 0, 1, 1], [], []>} : vector<8x128xf32>, vector<128x128xf32>, vector<8x128xf32> -> vector<8x128xf32>
    %c0_15 = arith.constant 0 : index
    %c0_16 = arith.constant 0 : index
    %17 = vector.load %arg7[%c0_15, %c0_16] : memref<1x128xf32, #tpu.memory_space<vmem>>, vector<1x128xf32>
    %18 = vector.broadcast %17 : vector<1x128xf32> to vector<8x128xf32>
    %19 = arith.addf %16, %18 : vector<8x128xf32>
    %c0_17 = arith.constant 0 : index
    %c0_18 = arith.constant 0 : index
    %20 = vector.load %arg8[%c0_17, %c0_18] : memref<8x128xf32, #tpu.memory_space<vmem>>, vector<8x128xf32>
    tpu.vector_store %arg8[%c0_17, %c0_18], %19 {strides = array<i32>} : memref<8x128xf32, #tpu.memory_space<vmem>>, vector<8x128xf32>,
    return
  }
  func.func @transform_0(%arg0: i32) -> (i32, i32) {
    %c0_i32 = arith.constant 0 : i32
    %c0_i32_0 = arith.constant 0 : i32
    return %arg0, %c0_i32 : i32, i32
  }
  func.func @transform_1(%arg0: i32) -> (i32, i32) {
    %c0_i32 = arith.constant 0 : i32
    %c0_i32_0 = arith.constant 0 : i32
    %c0_i32_1 = arith.constant 0 : i32
    return %c0_i32, %c0_i32_0 : i32, i32
  }
  func.func @transform_2(%arg0: i32) -> (i32, i32) {
    %c0_i32 = arith.constant 0 : i32
    %c0_i32_0 = arith.constant 0 : i32
    %c0_i32_1 = arith.constant 0 : i32
    return %c0_i32, %c0_i32_0 : i32, i32
  }
  func.func @transform_3(%arg0: i32) -> (i32, i32) {
    %c0_i32 = arith.constant 0 : i32
    %c0_i32_0 = arith.constant 0 : i32
    %c0_i32_1 = arith.constant 0 : i32
    return %c0_i32, %c0_i32_0 : i32, i32
  }
  func.func @transform_4(%arg0: i32) -> (i32, i32) {
    %c0_i32 = arith.constant 0 : i32
    %c0_i32_0 = arith.constant 0 : i32
    %c0_i32_1 = arith.constant 0 : i32
    return %c0_i32, %c0_i32_0 : i32, i32
  }
  func.func @transform_5(%arg0: i32) -> (i32, i32) {
    %c0_i32 = arith.constant 0 : i32
    %c0_i32_0 = arith.constant 0 : i32
    %c0_i32_1 = arith.constant 0 : i32
    return %c0_i32, %c0_i32_0 : i32, i32
  }
  func.func @transform_6(%arg0: i32) -> (i32, i32) {
    %c0_i32 = arith.constant 0 : i32
    %c0_i32_0 = arith.constant 0 : i32
    %c0_i32_1 = arith.constant 0 : i32
    return %c0_i32, %c0_i32_0 : i32, i32
  }
  func.func @transform_7(%arg0: i32) -> (i32, i32) {
    %c0_i32 = arith.constant 0 : i32
    %c0_i32_0 = arith.constant 0 : i32
    return %arg0, %c0_i32 : i32, i32
  }
}

</mosaic_0001>

<bundles_post_ra>
// kernel: a2c_forward_slab.1
= control target key start
LH: loop header
LB: loop body
LE: loop exit
PB: predicated region body
PF: predicated region fallthrough
CT: control target
= control target key end

     0   :  { %12 = vsyncpa [#allocation3], 0  ;;  %s836_s0 = inlined_call_operand.hbm [shape: f32[8,33], index: 0, kind: input, shape index: {}]   ;;  %s837_s1 = inlined_call_operand.hbm [shape: f32[33,128], index: 1, kind: input, shape index: {}]   ;;  %s838_s2 = inlined_call_operand.vmem [shape: f32[1,128], index: 2, kind: input, shape index: {}]   ;;  %s839_s3 = inlined_call_operand.hbm [shape: f32[128,128], index: 3, kind: input, shape index: {}]   ;;  %s840_s4 = inlined_call_operand.vmem [shape: f32[1,128], index: 4, kind: input, shape index: {}]   ;;  %s841_s5 = inlined_call_operand.hbm [shape: f32[128,128], index: 5, kind: input, shape index: {}]   ;;  %s842_s6 = inlined_call_operand.vmem [shape: f32[1,128], index: 6, kind: input, shape index: {}]   ;;  %s843_s7 = inlined_call_operand.hbm [shape: f32[8,128], index: 7, kind: output, shape index: {}]  }
   0x1   :  { %13 = vsyncpa [#allocation6], 0 }
   0x2   :  { %14 = vsyncpa [#allocation9], 0 }
   0x3   :  { %15 = vsyncpa [#allocation4], 0  ;;  %s687_s24 = smov [#allocation5]   ;;  %s569_s28 = scalar_lea.hbm %s837_s1, 640 }
   0x4   :  { %s31_s25 = sshll.u32 %s687_s24, 4  ;;  %p570_p0 = scmp.ne.s32.totalorder %s837_s1, %s569_s28  ;;  %s32_s25 = int_to_ptr.vmem [resolvable:$true] %s31_s25 }
   0x5   :  { %p573_p1 = scmp.lt.u32.totalorder %s569_s28, %s837_s1 }
   0x7   :  { %p575_p2 = pnand %p573_p1, %p570_p0 }
   0x9   :  { %578 = shalt.err (!%p575_p2)
}
   0xa   :  { %s579_s10 = scalar_lea.vmem %s32_s25, 640  ;;  %p584_p4 = scmp.lt.s32.totalorder %s32_s25, %s32_s25 }
   0xb   :  { %p580_p3 = scmp.ne.s32.totalorder %s32_s25, %s579_s10  ;;  %p585_p5 = scmp.lt.s32.totalorder %s579_s10, %s579_s10 }
   0xd   :  { %p586_p6 = por %p585_p5, %p584_p4 }
   0xf   :  { %p587_p7 = pnand %p586_p6, %p580_p3 }
  0x11   :  { %590 = shalt.err (!%p587_p7)
}
  0x12   :  { %s688_s11 = smov 128   ;;  %s689_s12 = smov 8  }
  0x13   :  { %37 = dma.hbm_to_vmem [thread:$0]  %s837_s1, 640, %s32_s25, [#allocation6], %s688_s11, %s688_s11, %s689_s12  }
  0x14   :  { %s690_s15 = smov [#allocation2]   ;;  %s691_s17 = smov [#allocation7]  }
  0x15   :  { %s22_s16 = sshll.u32 %s690_s15, 4  ;;  %s45_s18 = sshll.u32 %s691_s17, 4  ;;  %s23_s16 = int_to_ptr.vmem [resolvable:$true] %s22_s16  ;;  %s46_s18 = int_to_ptr.vmem [resolvable:$true] %s45_s18 }
  0x16   :  { %s591_s21 = scalar_lea.hbm %s836_s0, 128 }
  0x17   :  { %p592_p8 = scmp.ne.s32.totalorder %s836_s0, %s591_s21  ;;  %p595_p9 = scmp.lt.u32.totalorder %s591_s21, %s836_s0 }
  0x19   :  { %p597_p10 = pnand %p595_p9, %p592_p8 }
  0x1b   :  { %600 = shalt.err (!%p597_p10)
}
  0x1c   :  { %s601_s1 = scalar_lea.vmem %s23_s16, 128  ;;  %p606_p12 = scmp.lt.s32.totalorder %s23_s16, %s23_s16 }
  0x1d   :  { %p602_p11 = scmp.ne.s32.totalorder %s23_s16, %s601_s1  ;;  %p607_p13 = scmp.lt.s32.totalorder %s601_s1, %s601_s1 }
  0x1f   :  { %p608_p0 = por %p607_p13, %p606_p12 }
  0x21   :  { %p609_p1 = pnand %p608_p0, %p602_p11 }
  0x23   :  { %612 = shalt.err (!%p609_p1)
}
  0x24   :  { %25 = dma.hbm_to_vmem [thread:$0]  %s836_s0, 128, %s23_s16, [#allocation3]  }
  0x25   :  { %s613_s30 = scalar_lea.hbm %s839_s3, 2048 }
  0x26   :  { %p614_p2 = scmp.ne.s32.totalorder %s839_s3, %s613_s30  ;;  %p617_p3 = scmp.lt.u32.totalorder %s613_s30, %s839_s3 }
  0x28   :  { %p619_p4 = pnand %p617_p3, %p614_p2 }
  0x2a   :  { %622 = shalt.err (!%p619_p4)
}
  0x2b   :  { %s623_s14 = scalar_lea.vmem %s46_s18, 2048  ;;  %p628_p6 = scmp.lt.s32.totalorder %s46_s18, %s46_s18 }
  0x2c   :  { %p624_p5 = scmp.ne.s32.totalorder %s46_s18, %s623_s14  ;;  %p629_p7 = scmp.lt.s32.totalorder %s623_s14, %s623_s14 }
  0x2e   :  { %p630_p8 = por %p629_p7, %p628_p6 }
  0x30   :  { %p631_p9 = pnand %p630_p8, %p624_p5 }
  0x32   :  { %634 = shalt.err (!%p631_p9)
}
  0x33   :  { %51 = dma.hbm_to_vmem [thread:$0]  %s839_s3, 2048, %s46_s18, [#allocation6], %s688_s11, %s688_s11, %s689_s12  }
  0x34   :  { %s692_s16 = smov [#allocation8]   ;;  %s635_s21 = scalar_lea.hbm %s841_s5, 2048 }
  0x35   :  { %s59_s17 = sshll.u32 %s692_s16, 4  ;;  %p636_p10 = scmp.ne.s32.totalorder %s841_s5, %s635_s21  ;;  %s60_s17 = int_to_ptr.vmem [resolvable:$true] %s59_s17 }
  0x36   :  { %p639_p11 = scmp.lt.u32.totalorder %s635_s21, %s841_s5 }
  0x38   :  { %p641_p12 = pnand %p639_p11, %p636_p10 }
  0x3a   :  { %644 = shalt.err (!%p641_p12)
}
  0x3b   :  { %s645_s1 = scalar_lea.vmem %s60_s17, 2048  ;;  %p650_p0 = scmp.lt.s32.totalorder %s60_s17, %s60_s17 }
  0x3c   :  { %p646_p13 = scmp.ne.s32.totalorder %s60_s17, %s645_s1  ;;  %p651_p1 = scmp.lt.s32.totalorder %s645_s1, %s645_s1 }
  0x3e   :  { %p652_p2 = por %p651_p1, %p650_p0 }
  0x40   :  { %p653_p3 = pnand %p652_p2, %p646_p13 }
  0x42   :  { %656 = shalt.err (!%p653_p3)
}
  0x43   :  { %65 = dma.hbm_to_vmem [thread:$0]  %s841_s5, 2048, %s60_s17, [#allocation9], %s688_s11, %s688_s11, %s689_s12  }
  0x44   :  { %679 = dma.done.wait [#allocation3], 128  }
  0x45   :  { %680 = vsyncadd [#allocation3], 4294967168 }
  0x46   :  { %681 = dma.done.wait [#allocation6], 2688  }
  0x47   :  { %682 = vsyncadd [#allocation6], 4294964608 }
  0x48   :  { %683 = dma.done.wait [#allocation9], 2048  }
  0x49   :  { %684 = vsyncadd [#allocation9], 4294965248  ;;  %v693_v0 = vmov 0.0|0.0   ;;  %vm694_vm0 = vmmov 0   ;;  %v695_v1 = vmov 0.0   ;;  %v81_v2 = vld [vmem:[#allocation5] sm:$0xff] }
  0x4a   :  { %505 = vmatprep.subr.bf16.mxu0 %v693_v0  ;;  %432 = vmatprep.mubr.msk.f32.mxu0 %vm694_vm0, %v695_v1  ;;  %v82_v3 = vld [vmem:[#allocation5 + $0x8] sm:$0xff]  ;;  %v83_v4 = vld [vmem:[#allocation5 + $0x10] sm:$0xff]  ;;  %v84_v6 = vld [vmem:[#allocation5 + $0x18] sm:$0xff]  ;;  %vm97_vm1 = vcmask 1040384   ;;  %vm93_vm2 = vcmask 269312   ;;  %s696_s28 = smov [#allocation10]  }
  0x4b   :  { %511 = vmatprep.subr.bf16.mxu1 %v693_v0  ;;  %467 = vmatprep.mubr.msk.f32.mxu1 %vm694_vm0, %v695_v1  ;;  %v506_v5 = vpack.c.bf16 %v82_v3, %v81_v2  ;;  %v172_v7 = vld [vmem:[#allocation7] sm:$0xff]  ;;  %v173_v8 = vld [vmem:[#allocation7 + $0x8] sm:$0xff]  ;;  %v174_v9 = vld [vmem:[#allocation7 + $0x10] sm:$0xff]  ;;  %v509_v10 = vpack.c.bf16 %v84_v6, %v83_v4  ;;  %s366_s29 = sshll.u32 %s696_s28, 4  ;;  %s367_s29 = int_to_ptr.vmem [resolvable:$true] %s366_s29 }
  0x4c   :  { %v512_v11 = vpack.c.bf16 %v173_v8, %v172_v7  ;;  %v175_v12 = vld [vmem:[#allocation7 + $0x18] sm:$0xff]  ;;  %v176_v14 = vld [vmem:[#allocation7 + $0x20] sm:$0xff]  ;;  %v177_v15 = vld [vmem:[#allocation7 + $0x28] sm:$0xff]  ;;  %s657_s30 = scalar_lea.vmem %s367_s29, 128  ;;  %p662_p5 = scmp.lt.s32.totalorder %s367_s29, %s367_s29 }
  0x4d   :  { %507 = vmatpush3.bf16.msra.mxu0 %v506_v5  ;;  %v515_v13 = vpack.c.bf16 %v175_v12, %v174_v9  ;;  %v85_v16 = vld [vmem:[#allocation5 + $0x20] sm:$0x1]  ;;  %v80_v17 = vld [vmem:[#allocation2] sm:$0xff]  ;;  %v518_v18 = vpack.c.bf16 %v177_v15, %v176_v14  ;;  %v180_v22 = vld [vmem:[#allocation7 + $0x40] sm:$0xff]  ;;  %p658_p4 = scmp.ne.s32.totalorder %s367_s29, %s657_s30  ;;  %p663_p6 = scmp.lt.s32.totalorder %s657_s30, %s657_s30 }
  0x4e   :  { %508 = vmatprep.subr.bf16.mxu0 %v693_v0  ;;  %513 = vmatpush3.bf16.msra.mxu1 %v512_v11  ;;  %v178_v19 = vld [vmem:[#allocation7 + $0x30] sm:$0xff]  ;;  %v179_v20 = vld [vmem:[#allocation7 + $0x38] sm:$0xff]  ;;  %v181_v23 = vld [vmem:[#allocation7 + $0x48] sm:$0xff] }
  0x4f   :  { %514 = vmatprep.subr.bf16.mxu1 %v693_v0  ;;  %v521_v21 = vpack.c.bf16 %v179_v20, %v178_v19  ;;  %v524_v24 = vpack.c.bf16 %v181_v23, %v180_v22  ;;  %v182_v25 = vld [vmem:[#allocation7 + $0x50] sm:$0xff]  ;;  %v183_v26 = vld [vmem:[#allocation7 + $0x58] sm:$0xff]  ;;  %v184_v28 = vld [vmem:[#allocation7 + $0x60] sm:$0xff]  ;;  %p664_p7 = por %p663_p6, %p662_p5 }
  0x50   :  { %v527_v27 = vpack.c.bf16 %v183_v26, %v182_v25  ;;  %v185_v29 = vld [vmem:[#allocation7 + $0x68] sm:$0xff]  ;;  %v186_v31 = vld [vmem:[#allocation7 + $0x70] sm:$0xff]  ;;  %v187_v32 = vld [vmem:[#allocation7 + $0x78] sm:$0xff] }
  0x51   :  { %510 = vmatpush3.bf16.msra.mxu0 %v509_v10  ;;  %v530_v30 = vpack.c.bf16 %v185_v29, %v184_v28  ;;  %v533_v33 = vpack.c.bf16 %v187_v32, %v186_v31  ;;  %v266_v34 = vld [vmem:[#allocation8] sm:$0xff]  ;;  %v267_v35 = vld [vmem:[#allocation8 + $0x8] sm:$0xff]  ;;  %v268_v36 = vld [vmem:[#allocation8 + $0x10] sm:$0xff]  ;;  %p665_p8 = pnand %p664_p7, %p658_p4 }
  0x52   :  { %430 = vmatprep.subr.mxu0 %v695_v1  ;;  %516 = vmatpush3.bf16.msra.mxu1 %v515_v13  ;;  %v536_v37 = vpack.c.bf16 %v267_v35, %v266_v34  ;;  %v269_v38 = vld [vmem:[#allocation8 + $0x18] sm:$0xff]  ;;  %v270_v40 = vld [vmem:[#allocation8 + $0x20] sm:$0xff]  ;;  %v271_v41 = vld [vmem:[#allocation8 + $0x28] sm:$0xff] }
  0x53   :  { %517 = vmatprep.subr.bf16.mxu1 %v693_v0  ;;  %v539_v39 = vpack.c.bf16 %v269_v38, %v268_v36  ;;  %v542_v42 = vpack.c.bf16 %v271_v41, %v270_v40  ;;  %v272_v43 = vld [vmem:[#allocation8 + $0x30] sm:$0xff]  ;;  %v273_v44 = vld [vmem:[#allocation8 + $0x38] sm:$0xff]  ;;  %v274_v46 = vld [vmem:[#allocation8 + $0x40] sm:$0xff] }
  0x54   :  { %v545_v45 = vpack.c.bf16 %v273_v44, %v272_v43  ;;  %v275_v47 = vld [vmem:[#allocation8 + $0x48] sm:$0xff]  ;;  %v276_v49 = vld [vmem:[#allocation8 + $0x50] sm:$0xff]  ;;  %v277_v50 = vld [vmem:[#allocation8 + $0x58] sm:$0xff] }
  0x55   :  { %431 = vmatpush3.msk.msra.mxu0 %vm97_vm1, %v85_v16  ;;  %v548_v48 = vpack.c.bf16 %v275_v47, %v274_v46  ;;  %v551_v51 = vpack.c.bf16 %v277_v50, %v276_v49  ;;  %v278_v52 = vld [vmem:[#allocation8 + $0x60] sm:$0xff]  ;;  %v279_v53 = vld [vmem:[#allocation8 + $0x68] sm:$0xff]  ;;  %v377_v55 = vld [vmem:[%s838_s2] ss:$0 sm:$0xff] }
  0x56   :  { %433 = vmatmul.mubr.msk.f32.vlgmr.msra.gmra.mrb[0].mxu0 %vm93_vm2, %v80_v17  ;;  %535 = vmatprep.subr.bf16.mxu0 %v693_v0  ;;  %v554_v54 = vpack.c.bf16 %v279_v53, %v278_v52  ;;  %v280_v60 = vld [vmem:[#allocation8 + $0x70] sm:$0xff]  ;;  %v281_v61 = vld [vmem:[#allocation8 + $0x78] sm:$0xff] }
  0x57   :  { %519 = vmatpush3.bf16.msra.mxu1 %v518_v18  ;;  %502 = vmatprep.mubr.msk.f32.mxu0 %vm694_vm0, %v695_v1  ;;  %v557_v62 = vpack.c.bf16 %v281_v61, %v280_v60  ;;  %v380_v63 = vld [vmem:[%s840_s4] ss:$0 sm:$0xff] }
  0x58   :  { %520 = vmatprep.subr.bf16.mxu1 %v693_v0  ;;  %537 = vmatpush3.bf16.msra.mxu0 %v536_v37  ;;  %v381_v4 = vld [vmem:[%s842_s6] ss:$0 sm:$0xff] }
  0x59   :  { %538 = vmatprep.subr.bf16.mxu0 %v693_v0 }
  0x5b   :  { %522 = vmatpush3.bf16.msra.mxu1 %v521_v21 }
  0x5c   :  { %523 = vmatprep.subr.bf16.mxu1 %v693_v0  ;;  %540 = vmatpush3.bf16.msra.mxu0 %v539_v39 }
  0x5d   :  { %541 = vmatprep.subr.bf16.mxu0 %v693_v0 }
  0x5f   :  { %525 = vmatpush3.bf16.msra.mxu1 %v524_v24 }
  0x60   :  { %526 = vmatprep.subr.bf16.mxu1 %v693_v0  ;;  %543 = vmatpush3.bf16.msra.mxu0 %v542_v42 }
  0x61   :  { %544 = vmatprep.subr.bf16.mxu0 %v693_v0 }
  0x63   :  { %528 = vmatpush3.bf16.msra.mxu1 %v527_v27 }
  0x64   :  { %529 = vmatprep.subr.bf16.mxu1 %v693_v0  ;;  %546 = vmatpush3.bf16.msra.mxu0 %v545_v45 }
  0x65   :  { %547 = vmatprep.subr.bf16.mxu0 %v693_v0 }
  0x67   :  { %531 = vmatpush3.bf16.msra.mxu1 %v530_v30 }
  0x68   :  { %532 = vmatprep.subr.bf16.mxu1 %v693_v0  ;;  %549 = vmatpush3.bf16.msra.mxu0 %v548_v48 }
  0x69   :  { %550 = vmatprep.subr.bf16.mxu0 %v693_v0 }
  0x6b   :  { %534 = vmatpush3.bf16.msra.mxu1 %v533_v33 }
  0x6c   :  { %552 = vmatpush3.bf16.msra.mxu0 %v551_v51 }
  0x6d   :  { %553 = vmatprep.subr.bf16.mxu0 %v693_v0 }
  0x70   :  { %555 = vmatpush3.bf16.msra.mxu0 %v554_v54 }
  0x71   :  { %556 = vmatprep.subr.bf16.mxu0 %v693_v0 }
  0x74   :  { %558 = vmatpush3.bf16.msra.mxu0 %v557_v62 }
 0x129   :  { %v167_v56 = vpop.f32.mrb[0].mxu0 }
 0x12a   :  { %v168_v57 = vadd.f32 %v377_v55, %v167_v56  ;;  %v434_v58 = vpop.f32.mrb[1].mxu0 }
 0x12c   :  { %v171_v59 = vmax.f32 %v168_v57, 0.0 }
 0x12e   :  { %468 = vmatmul.mubr.f32.vlgmr.msra.gmra.mrb[0].mxu1 %v171_v59 }
 0x201   :  { %v261_v1 = vpop.f32.mrb[0].mxu1 }
 0x202   :  { %v262_v2 = vadd.f32 %v380_v63, %v261_v1  ;;  %v469_v0 = vpop.f32.mrb[1].mxu1 }
 0x204   :  { %v265_v3 = vmax.f32 %v262_v2, 0.0 }
 0x206   :  { %503 = vmatmul.mubr.f32.vlgmr.msra.gmra.mrb[2].mxu0 %v265_v3 }
 0x2d9   :  { %v355_v5 = vpop.f32.mrb[2].mxu0 }
 0x2da   :  { %v356_v6 = vadd.f32 %v381_v4, %v355_v5  ;;  %v504_v7 = vpop.f32.mrb[3].mxu0 }
 0x2dc   :  { %359 = vst [vmem:[#allocation10] sm:$0xff] %v356_v6 }
 0x2dd   :  { %668 = shalt.err (!%p665_p8)
}
 0x2de   :  { %s669_s9 = scalar_lea.hbm %s843_s7, 128 }
 0x2df   :  { %p670_p9 = scmp.ne.s32.totalorder %s843_s7, %s669_s9  ;;  %p673_p10 = scmp.lt.u32.totalorder %s669_s9, %s843_s7 }
 0x2e1   :  { %p675_p11 = pnand %p673_p10, %p670_p9 }
 0x2e3   :  { %678 = shalt.err (!%p675_p11)
}
 0x2e4   :  { %369 = dma.vmem_to_hbm [thread:$0]  %s367_s29, 128, %s843_s7, [#allocation4]  }
 0x2e5   :  { %685 = dma.done.wait [#allocation4], 128  }
 0x2e6   :  { %686 = vsyncadd [#allocation4], 4294967168 }
 0x2e7   :  { %373 = vsyncpa [#allocation3], 1 }
 0x2e8   :  { %374 = vsyncpa [#allocation6], 1 }
 0x2e9   :  { %375 = vsyncpa [#allocation9], 1 }
 0x2ea   :  { %376 = vsyncpa [#allocation4], 1 }

</bundles_post_ra>
